<compile_context>
chip_gen: v6e
topology: v6e:2x2x1
jax: 0.10.0
libtpu: 0.0.40
codegen_flags: <defaults>
</compile_context>

<pallas_src>
import jax
import jax.numpy as jnp
from jax.experimental import pallas as pl
from jax.experimental.pallas import tpu as pltpu

NEGATIVE_SLOPE = 0.01   # undefined global in source module -> LeakyReLU default
POW_EXP = 0.000416


def _fused_jnp(x, y):
    # Small-input fallback / reference: XLA fuses this 4-op elementwise chain
    # at the HBM roofline; pallas_call fixed overhead dominates below ~1 MiB.
    v1 = jnp.maximum(x, 0.0) * NEGATIVE_SLOPE
    v2 = jnp.power(v1, POW_EXP)
    # v3 = relu(v2) in the original module is dead code (not returned).
    return jnp.where(y, v1, v2)


def _model_kernel(x_ref, y_ref, o_ref):
    x = x_ref[...]
    m = y_ref[...]
    keep = m if m.dtype == jnp.bool_ else (m != 0)
    v1 = jnp.maximum(x, 0.0) * NEGATIVE_SLOPE
    # v1 >= 0 by construction, so v1 ** p == exp(p * log(v1)) exactly
    # (log(0) = -inf -> exp(-inf) = 0 == pow(0, p) for p > 0).  The explicit
    # log/exp chain avoids jnp.power's negative-base select filler (VPU ops /
    # extra live vregs); both transcendentals run on the EUP.
    v2 = jnp.exp(POW_EXP * jnp.log(v1))
    o_ref[...] = jnp.where(keep, v1, v2)


def model_forward(x, y, *, block_rows=256, lanes=2048, min_pallas_elems=1 << 18):
    """x: float32 [...]; y: bool [...] (same shape) -> float32 [...]."""
    assert x.shape == y.shape
    orig_shape = x.shape
    total = x.size

    if total < min_pallas_elems:
        return _fused_jnp(x, y)

    xf = x.reshape(-1)
    yf = y.reshape(-1)                 # bool is already 1 B/elem in HBM; no astype

    rows = pl.cdiv(total, lanes)
    pad = rows * lanes - total
    if pad:
        # Only the <= (lanes-1)-element lane tail is padded; divisible shapes
        # (the common case) reshape for free.  Zeros -> pow(0, p) = 0, no NaNs.
        xf = jnp.pad(xf, (0, pad))
        yf = jnp.pad(yf, (0, pad))

    x2 = xf.reshape(rows, lanes)
    y2 = yf.reshape(rows, lanes)

    # block_rows is a multiple of 32 so the byte-wide mask keeps (32,128)
    # tiling; a single full-extent block is used when the array is small.
    br = block_rows if rows > block_rows else rows
    grid = (pl.cdiv(rows, br),)        # partial last block is masked by Pallas

    out2 = pl.pallas_call(
        _model_kernel,
        out_shape=jax.ShapeDtypeStruct((rows, lanes), x.dtype),
        grid_spec=pltpu.PrefetchScalarGridSpec(
            num_scalar_prefetch=0,
            grid=grid,
            in_specs=[
                pl.BlockSpec((br, lanes), lambda i: (i, 0)),
                pl.BlockSpec((br, lanes), lambda i: (i, 0)),
            ],
            out_specs=pl.BlockSpec((br, lanes), lambda i: (i, 0)),
        ),
        compiler_params=pltpu.CompilerParams(
            # Rows are independent -> shard the 1-D grid across TensorCores.
            # TODO(synk): if plain "parallel" does not split across v7x's two
            # TCs, switch to pltpu.CORE_PARALLEL / pl.core_map.
            dimension_semantics=("parallel",),
            # ~9 MiB double-buffered working set at 256x2048; 32 MiB cap is
            # safe on every generation (v5e/v6e 128 MiB physical, v7x 64 MiB/TC).
            vmem_limit_bytes=32 << 20,
        ),
    )(x2, y2)

    out = out2.reshape(-1)
    if pad:
        out = out[:total]
    return out.reshape(orig_shape)


if __name__ == "__main__":
    key = jax.random.PRNGKey(0)
    kx, ky, kx2, ky2, kx3, ky3 = jax.random.split(key, 6)

    # 1) Spec-implied small NCHW shape.  Default path uses the fused-jnp
    #    fallback; also force the same data through the Pallas kernel.
    B, C, H, W = 2, 4, 16, 16
    x = jax.random.normal(kx, (B, C, H, W), dtype=jnp.float32)
    y = jax.random.bernoulli(ky, 0.5, (B, C, H, W))
    ref = _fused_jnp(x, y)

    out = jax.block_until_ready(model_forward(x, y))
    assert out.shape == (B, C, H, W)
    assert jnp.allclose(out, ref, atol=1e-5, rtol=1e-5), "fallback mismatch"

    out_p = jax.block_until_ready(model_forward(x, y, min_pallas_elems=0))
    assert jnp.allclose(out_p, ref, atol=1e-5, rtol=1e-5), "pallas mismatch"

    # 2) Odd shape forced through Pallas -> exercises the lane-tail pad path.
    x_odd = jax.random.normal(kx2, (2, 3, 5, 7), dtype=jnp.float32)
    y_odd = jax.random.bernoulli(ky2, 0.5, (2, 3, 5, 7))
    out_odd = jax.block_until_ready(model_forward(x_odd, y_odd, min_pallas_elems=0))
    assert out_odd.shape == (2, 3, 5, 7)
    assert jnp.allclose(out_odd, _fused_jnp(x_odd, y_odd), atol=1e-5, rtol=1e-5), \
        "pallas mismatch (padded path)"

    # 3) Moderate shape (4 MiB) -> multi-block Pallas path, no padding.
    x_big = jax.random.normal(kx3, (8, 8, 64, 256), dtype=jnp.float32)
    y_big = jax.random.bernoulli(ky3, 0.5, (8, 8, 64, 256))
    ref_big = _fused_jnp(x_big, y_big)
    out_big = jax.block_until_ready(model_forward(x_big, y_big))
    assert jnp.allclose(out_big, ref_big, atol=1e-5, rtol=1e-5), "pallas mismatch (big)"

    # 4) Same data with a block size that does not divide the row count ->
    #    exercises the partial-edge-block path (no wrapper-side pad/slice).
    out_edge = jax.block_until_ready(model_forward(x_big, y_big, block_rows=96))
    assert jnp.allclose(out_edge, ref_big, atol=1e-5, rtol=1e-5), \
        "pallas mismatch (partial edge block)"

    print("KERNEL_OK")
</pallas_src>

<mosaic_0001>
module attributes {stable_mosaic.version = 11 : i64} {
  func.func @_model_kernel(%arg0: i32, %arg1: memref<1x2048xf32, #tpu.memory_space<vmem>>, %arg2: memref<1x2048xi32, #tpu.memory_space<vmem>>, %arg3: memref<1x2048xf32, #tpu.memory_space<vmem>>) attributes {dimension_semantics = [#tpu.dimension_semantics<parallel>], iteration_bounds = array<i64: 1>, scalar_prefetch = 0 : i64, scratch_operands = 0 : i64, tpu.core_type = #tpu.core_type<tc>, window_params = [{transform_indices = @transform_0, window_bounds = array<i64: 1, 2048>}, {transform_indices = @transform_1, window_bounds = array<i64: 1, 2048>}, {transform_indices = @transform_2, window_bounds = array<i64: 1, 2048>}]} {
    %c0 = arith.constant 0 : index
    %c0_0 = arith.constant 0 : index
    %0 = vector.load %arg1[%c0, %c0_0] : memref<1x2048xf32, #tpu.memory_space<vmem>>, vector<1x2048xf32>
    %c0_1 = arith.constant 0 : index
    %c0_2 = arith.constant 0 : index
    %1 = vector.load %arg2[%c0_1, %c0_2] : memref<1x2048xi32, #tpu.memory_space<vmem>>, vector<1x2048xi32>
    %cst = arith.constant dense<0> : vector<1x2048xi32>
    %2 = arith.cmpi ne, %1, %cst : vector<1x2048xi32>
    %cst_3 = arith.constant 0.000000e+00 : f32
    %3 = vector.broadcast %cst_3 : f32 to vector<1x2048xf32>
    %4 = arith.maximumf %0, %3 : vector<1x2048xf32>
    %cst_4 = arith.constant 0.00999999977 : f32
    %5 = vector.broadcast %cst_4 : f32 to vector<1x2048xf32>
    %6 = arith.mulf %4, %5 : vector<1x2048xf32>
    %7 = math.log %6 : vector<1x2048xf32>
    %cst_5 = arith.constant 4.160000e-04 : f32
    %8 = vector.broadcast %cst_5 : f32 to vector<1x2048xf32>
    %9 = arith.mulf %8, %7 : vector<1x2048xf32>
    %10 = math.exp %9 : vector<1x2048xf32>
    %11 = arith.select %2, %6, %10 : vector<1x2048xi1>, vector<1x2048xf32>
    %c0_6 = arith.constant 0 : index
    %c0_7 = arith.constant 0 : index
    %12 = vector.load %arg3[%c0_6, %c0_7] : memref<1x2048xf32, #tpu.memory_space<vmem>>, vector<1x2048xf32>
    tpu.vector_store %arg3[%c0_6, %c0_7], %11 {strides = array<i32>} : memref<1x2048xf32, #tpu.memory_space<vmem>>, vector<1x2048xf32>,
    return
  }
  func.func @transform_0(%arg0: i32) -> (i32, i32) {
    %c0_i32 = arith.constant 0 : i32
    %c0_i32_0 = arith.constant 0 : i32
    return %arg0, %c0_i32 : i32, i32
  }
  func.func @transform_1(%arg0: i32) -> (i32, i32) {
    %c0_i32 = arith.constant 0 : i32
    %c0_i32_0 = arith.constant 0 : i32
    return %arg0, %c0_i32 : i32, i32
  }
  func.func @transform_2(%arg0: i32) -> (i32, i32) {
    %c0_i32 = arith.constant 0 : i32
    %c0_i32_0 = arith.constant 0 : i32
    return %arg0, %c0_i32 : i32, i32
  }
}

</mosaic_0001>

<bundles_post_ra>
// kernel: tpu_custom_call.1
= control target key start
LH: loop header
LB: loop body
LE: loop exit
PB: predicated region body
PF: predicated region fallthrough
CT: control target
= control target key end

     0   :  { %s112_s0 = inlined_call_operand.vmem [shape: f32[1,2048], index: 0, kind: input, shape index: {}]   ;;  %s113_s1 = inlined_call_operand.vmem [shape: s32[1,2048], index: 1, kind: input, shape index: {}]   ;;  %s114_s2 = inlined_call_operand.hbm [shape: f32[1,2048], index: 2, kind: output, shape index: {}]  }
   0x1   :  { %v12_v0 = vld [vmem:[%s112_s0] sm:$0xff]  ;;  %v13_v1 = vld [vmem:[%s112_s0 + $0x8] sm:$0xff] }
   0x2   :  { %v18_v2 = vmax.f32 %v12_v0, 0.0  ;;  %v19_v3 = vmax.f32 %v13_v1, 0.0 }
   0x3   :  { %7 = vsyncpa [#allocation3], 0  ;;  %v14_v14 = vld [vmem:[%s113_s1] sm:$0xff]  ;;  %v15_v15 = vld [vmem:[%s113_s1 + $0x8] sm:$0xff]  ;;  %s81_s16 = smov [#allocation2]  }
   0x4   :  { %v20_v4 = vmul.f32 0.01, %v18_v2  ;;  %v21_v5 = vmul.f32 0.01, %v19_v3  ;;  %vm16_vm0 = vcmp.ne.s32.totalorder %v14_v14, 0  ;;  %s42_s17 = sshll.u32 %s81_s16, 4  ;;  %s43_s17 = int_to_ptr.vmem [resolvable:$true] %s42_s17 }
   0x5   :  { %vm17_vm1 = vcmp.ne.s32.totalorder %v15_v15, 0  ;;  %s59_s18 = scalar_lea.vmem %s43_s17, 256  ;;  %p64_p1 = scmp.lt.s32.totalorder %s43_s17, %s43_s17 }
   0x6   :  { %51 = vlog2.f32 %v20_v4  ;;  %p60_p0 = scmp.ne.s32.totalorder %s43_s17, %s59_s18  ;;  %p65_p2 = scmp.lt.s32.totalorder %s59_s18, %s59_s18 }
   0x7   :  { %53 = vlog2.f32 %v21_v5 }
   0x8   :  { %p66_p3 = por %p65_p2, %p64_p1 }
   0xa   :  { %p67_p4 = pnand %p66_p3, %p60_p0 }
  0x13   :  { %v52_v6 = vpop.eup %51 }
  0x14   :  { %v54_v7 = vpop.eup %53  ;;  %v23_v8 = vmul.f32 0.6931472, %v52_v6 }
  0x15   :  { %v25_v9 = vmul.f32 0.6931472, %v54_v7 }
  0x16   :  { %v26_v10 = vmul.f32 0.000416, %v23_v8 }
  0x17   :  { %v27_v11 = vmul.f32 0.000416, %v25_v9 }
  0x18   :  { %v28_v12 = vmul.f32 1.442695, %v26_v10 }
  0x19   :  { %v30_v13 = vmul.f32 1.442695, %v27_v11 }
  0x1a   :  { %55 = vpow2.f32 %v28_v12 }
  0x1b   :  { %57 = vpow2.f32 %v30_v13 }
  0x27   :  { %v56_v16 = vpop.eup %55 }
  0x28   :  { %v58_v17 = vpop.eup %57  ;;  %v32_v18 = vsel %vm16_vm0, %v20_v4, %v56_v16 }
  0x29   :  { %34 = vst [vmem:[#allocation2] sm:$0xff] %v32_v18  ;;  %v33_v19 = vsel %vm17_vm1, %v21_v5, %v58_v17 }
  0x2a   :  { %35 = vst [vmem:[#allocation2 + $0x8] sm:$0xff] %v33_v19 }
  0x2b   :  { %70 = shalt.err (!%p67_p4)
}
  0x2c   :  { %45 = dma.vmem_to_hbm [thread:$0]  %s43_s17, 256, %s114_s2, [#allocation3]  }
  0x2d   :  { %79 = dma.done.wait [#allocation3], 256  }
  0x2e   :  { %80 = vsyncadd [#allocation3], 4294967040 }
  0x2f   :  { %49 = vsyncpa [#allocation3], 1 }

</bundles_post_ra>
